<compile_context>
chip_gen: v5e
topology: v5e:2x2
jax: 0.10.0
libtpu: 0.0.40
codegen_flags: <defaults>
</compile_context>

<pallas_src>
import functools

import jax
import jax.numpy as jnp
import numpy as np
from jax.experimental import pallas as pl
from jax.experimental.pallas import tpu as pltpu


def _round_up(x: int, m: int) -> int:
    return (x + m - 1) // m * m


def _posemb_kernel(xt_ref, ot_ref, *, freqs, d):
    """One lane tile: xt_ref (d, TC) -> ot_ref (d*(1+2F), TC).

    Original rows are on the lane axis (TC lanes, multiple of 128), so the
    multiplies, sin/cos and stores below are all full-lane vector ops.  The
    sin/cos arguments for all frequencies are packed into one dense
    (F*d, TC) slab so the two transcendental calls run on ~fully occupied
    vregs (instead of d/8-occupied ones).
    """
    x = xt_ref[...].astype(jnp.float32)          # f32 trig even for bf16 input
    ot_ref[0:d, :] = x.astype(ot_ref.dtype)

    # Dense argument slab (F*d, TC): per-frequency multiplies are cheap VALU
    # ops; the sublane concat packs them so sin/cos are vreg-dense.
    args = jnp.concatenate([f * x for f in freqs], axis=0)
    s = jnp.sin(args)                            # one batched sin
    c = jnp.cos(args)                            # one batched cos

    # Stream each (d, TC) piece straight into its sublane slice of the output
    # block, keeping the module's [x, sin f0, cos f0, sin f1, cos f1, ...]
    # row order.  For d=4 these are 4-sublane-aligned masked stores; for d=3
    # some slices straddle an 8-sublane tile (XLU shift), which stays hidden
    # under HBM time (kept to preserve the standard output ordering).
    for k in range(len(freqs)):
        sk = s[k * d:(k + 1) * d, :]
        ck = c[k * d:(k + 1) * d, :]
        ot_ref[(2 * k + 1) * d:(2 * k + 2) * d, :] = sk.astype(ot_ref.dtype)
        ot_ref[(2 * k + 2) * d:(2 * k + 3) * d, :] = ck.astype(ot_ref.dtype)


def nerf_pos_embedding(x: jax.Array, num_freqs: int, logscale: bool = True, *,
                       max_lane_tile: int = 65536,
                       vmem_budget_bytes: int = 30 * 1024 * 1024,
                       vmem_limit_bytes: int = 48 * 1024 * 1024,
                       return_transposed: bool = False) -> jax.Array:
    """Pallas equivalent of NeRFPosEmbedding.forward."""
    # Compile-time constants via plain Python/numpy (no device round trip).
    if logscale:
        freqs = tuple(float(2.0 ** k) for k in range(num_freqs))
    else:
        freqs = tuple(float(f)
                      for f in np.linspace(1.0, 2.0 ** (num_freqs - 1), num_freqs))

    orig_shape = x.shape
    d = int(orig_shape[-1])
    rows = int(np.prod(orig_shape[:-1])) if len(orig_shape) > 1 else 1
    d_out = d * (1 + 2 * num_freqs)

    x2d = x.reshape(rows, d)
    if num_freqs == 0:                           # torch.cat([x]) == x
        return x2d.T if return_transposed else x

    # Rows onto the lane axis.  Input-sized transpose (1/(1+2F) of the output
    # traffic), done once by XLA in the wrapper.
    x_t = x2d.T                                  # (d, rows)

    # ---- tile sizing (VMEM-accurate, sublane padding included) -------------
    itemsize = jnp.dtype(x.dtype).itemsize
    sub = 8 if itemsize >= 4 else (16 if itemsize == 2 else 32)
    fd = num_freqs * d
    # Bytes per lane: double-buffered in/out blocks (sublane padded) plus the
    # in-kernel f32 intermediates (x cast, args, sin, cos).
    per_lane = ((2 * _round_up(d, sub) + 2 * _round_up(d_out, sub)) * itemsize
                + (_round_up(d, 8) + 3 * _round_up(fd, 8)) * 4)
    tc_fit = max(128, (vmem_budget_bytes // per_lane) // 128 * 128)
    tile_cap = min(_round_up(max_lane_tile, 128), tc_fit)

    # Balanced tiling: pick the tile COUNT first, then a 128-aligned tile
    # size, so padding is < n_tiles*128 rows (never a whole tile).  Keep >= 2
    # (and an even number of) steps so the "parallel" axis shards across both
    # v7x TensorCores.
    n_tiles = pl.cdiv(rows, tile_cap)
    if rows >= 256:
        n_tiles = max(n_tiles, 2)
    if n_tiles > 1 and n_tiles % 2:
        n_tiles += 1
    tc = _round_up(pl.cdiv(rows, n_tiles), 128)
    rows_p = n_tiles * tc
    if rows_p != rows:
        x_t = jnp.pad(x_t, ((0, 0), (0, rows_p - rows)))

    kernel = functools.partial(_posemb_kernel, freqs=freqs, d=d)
    out_t = pl.pallas_call(
        kernel,
        out_shape=jax.ShapeDtypeStruct((d_out, rows_p), x.dtype),
        grid_spec=pltpu.PrefetchScalarGridSpec(
            num_scalar_prefetch=0,
            grid=(n_tiles,),
            in_specs=[pl.BlockSpec((d, tc), lambda i: (0, i))],
            out_specs=pl.BlockSpec((d_out, tc), lambda i: (0, i)),
        ),
        compiler_params=pltpu.CompilerParams(
            dimension_semantics=("parallel",),   # shard steps across v7x TCs
            vmem_limit_bytes=vmem_limit_bytes,
        ),
    )(x_t)

    if return_transposed:
        # Performance path: (d_out, rows), no back-transpose.  d_out <= ~64 is
        # the contraction dim, i.e. already the MXU-friendly transposed-LHS
        # orientation for a downstream matmul.
        return out_t[:, :rows]

    # Row-major module semantics.  NOTE: this XLA transpose re-reads and
    # re-writes the whole (1+2F)x-sized output and dominates the default
    # path; prefer return_transposed=True or fuse into the consumer.
    out2d = out_t[:, :rows].T
    return out2d.reshape(*orig_shape[:-1], d_out)


def _reference(x, num_freqs, logscale=True):
    """Pure-JAX reference mirroring the PyTorch forward."""
    if logscale:
        freq_bands = [float(2.0 ** k) for k in range(num_freqs)]
    else:
        freq_bands = [float(f)
                      for f in np.linspace(1.0, 2.0 ** (num_freqs - 1), num_freqs)]
    out = [x]
    for f in freq_bands:
        out += [jnp.sin(f * x), jnp.cos(f * x)]
    return jnp.concatenate(out, axis=-1)


if __name__ == "__main__":
    num_freqs = 4

    # small ray-batch-like input: (batch=2, rays=128, coords=4)
    x = jax.random.normal(jax.random.PRNGKey(0), (2, 128, 4), dtype=jnp.float32)
    out = jax.block_until_ready(nerf_pos_embedding(x, num_freqs=num_freqs, logscale=True))
    ref = _reference(x, num_freqs, logscale=True)
    assert out.shape == ref.shape == (2, 128, 4 * (1 + 2 * num_freqs)), out.shape
    assert jnp.allclose(out, ref, atol=1e-5, rtol=1e-5), "mismatch vs reference"

    # odd shape: d=3, non-logscale bands, row padding, misaligned sublane slices
    x2 = jax.random.normal(jax.random.PRNGKey(1), (3, 50, 3), dtype=jnp.float32)
    out2 = jax.block_until_ready(nerf_pos_embedding(x2, num_freqs=5, logscale=False))
    ref2 = _reference(x2, 5, logscale=False)
    assert out2.shape == ref2.shape == (3, 50, 3 * (1 + 2 * 5)), out2.shape
    assert jnp.allclose(out2, ref2, atol=1e-5, rtol=1e-5), "mismatch vs reference (padded)"

    # performance path: transposed (d_out, rows) output (no back-transpose)
    out_t = jax.block_until_ready(
        nerf_pos_embedding(x2, num_freqs=5, logscale=False, return_transposed=True))
    assert out_t.shape == (3 * (1 + 2 * 5), 3 * 50), out_t.shape
    assert jnp.allclose(out_t, ref2.reshape(-1, ref2.shape[-1]).T,
                        atol=1e-5, rtol=1e-5), "mismatch vs reference (transposed)"

    print("KERNEL_OK")
</pallas_src>

<mosaic_0001>
module attributes {stable_mosaic.version = 11 : i64} {
  func.func @_posemb_kernel(%arg0: i32, %arg1: memref<4x128xf32, #tpu.memory_space<vmem>>, %arg2: memref<36x128xf32, #tpu.memory_space<vmem>>) attributes {dimension_semantics = [#tpu.dimension_semantics<parallel>], iteration_bounds = array<i64: 2>, scalar_prefetch = 0 : i64, scratch_operands = 0 : i64, tpu.core_type = #tpu.core_type<tc>, window_params = [{transform_indices = @transform_0, window_bounds = array<i64: 4, 128>}, {transform_indices = @transform_1, window_bounds = array<i64: 36, 128>}]} {
    %c0 = arith.constant 0 : index
    %c0_0 = arith.constant 0 : index
    %0 = vector.load %arg1[%c0, %c0_0] : memref<4x128xf32, #tpu.memory_space<vmem>>, vector<4x128xf32>
    %c0_1 = arith.constant 0 : index
    %c0_2 = arith.constant 0 : index
    %1 = vector.load %arg2[%c0_1, %c0_2] : memref<36x128xf32, #tpu.memory_space<vmem>>, vector<4x128xf32>
    tpu.vector_store %arg2[%c0_1, %c0_2], %0 {strides = array<i32>} : memref<36x128xf32, #tpu.memory_space<vmem>>, vector<4x128xf32>,
    %cst = arith.constant 1.000000e+00 : f32
    %2 = vector.broadcast %cst : f32 to vector<4x128xf32>
    %3 = arith.mulf %2, %0 : vector<4x128xf32>
    %cst_3 = arith.constant 2.000000e+00 : f32
    %4 = vector.broadcast %cst_3 : f32 to vector<4x128xf32>
    %5 = arith.mulf %4, %0 : vector<4x128xf32>
    %cst_4 = arith.constant 4.000000e+00 : f32
    %6 = vector.broadcast %cst_4 : f32 to vector<4x128xf32>
    %7 = arith.mulf %6, %0 : vector<4x128xf32>
    %cst_5 = arith.constant 8.000000e+00 : f32
    %8 = vector.broadcast %cst_5 : f32 to vector<4x128xf32>
    %9 = arith.mulf %8, %0 : vector<4x128xf32>
    %10 = tpu.concatenate %3, %5, %7, %9 in 0 : vector<4x128xf32>, vector<4x128xf32>, vector<4x128xf32>, vector<4x128xf32> -> vector<16x128xf32>
    %11 = math.sin %10 : vector<16x128xf32>
    %12 = math.cos %10 : vector<16x128xf32>
    %13 = vector.extract_strided_slice %11 {offsets = [0, 0], sizes = [4, 128], strides = [1, 1]} : vector<16x128xf32> to vector<4x128xf32>
    %14 = vector.extract_strided_slice %12 {offsets = [0, 0], sizes = [4, 128], strides = [1, 1]} : vector<16x128xf32> to vector<4x128xf32>
    %c4 = arith.constant 4 : index
    %c0_6 = arith.constant 0 : index
    %15 = vector.load %arg2[%c4, %c0_6] : memref<36x128xf32, #tpu.memory_space<vmem>>, vector<4x128xf32>
    tpu.vector_store %arg2[%c4, %c0_6], %13 {strides = array<i32>} : memref<36x128xf32, #tpu.memory_space<vmem>>, vector<4x128xf32>,
    %c8 = arith.constant 8 : index
    %c0_7 = arith.constant 0 : index
    %16 = vector.load %arg2[%c8, %c0_7] : memref<36x128xf32, #tpu.memory_space<vmem>>, vector<4x128xf32>
    tpu.vector_store %arg2[%c8, %c0_7], %14 {strides = array<i32>} : memref<36x128xf32, #tpu.memory_space<vmem>>, vector<4x128xf32>,
    %17 = vector.extract_strided_slice %11 {offsets = [4, 0], sizes = [4, 128], strides = [1, 1]} : vector<16x128xf32> to vector<4x128xf32>
    %18 = vector.extract_strided_slice %12 {offsets = [4, 0], sizes = [4, 128], strides = [1, 1]} : vector<16x128xf32> to vector<4x128xf32>
    %c12 = arith.constant 12 : index
    %c0_8 = arith.constant 0 : index
    %19 = vector.load %arg2[%c12, %c0_8] : memref<36x128xf32, #tpu.memory_space<vmem>>, vector<4x128xf32>
    tpu.vector_store %arg2[%c12, %c0_8], %17 {strides = array<i32>} : memref<36x128xf32, #tpu.memory_space<vmem>>, vector<4x128xf32>,
    %c16 = arith.constant 16 : index
    %c0_9 = arith.constant 0 : index
    %20 = vector.load %arg2[%c16, %c0_9] : memref<36x128xf32, #tpu.memory_space<vmem>>, vector<4x128xf32>
    tpu.vector_store %arg2[%c16, %c0_9], %18 {strides = array<i32>} : memref<36x128xf32, #tpu.memory_space<vmem>>, vector<4x128xf32>,
    %21 = vector.extract_strided_slice %11 {offsets = [8, 0], sizes = [4, 128], strides = [1, 1]} : vector<16x128xf32> to vector<4x128xf32>
    %22 = vector.extract_strided_slice %12 {offsets = [8, 0], sizes = [4, 128], strides = [1, 1]} : vector<16x128xf32> to vector<4x128xf32>
    %c20 = arith.constant 20 : index
    %c0_10 = arith.constant 0 : index
    %23 = vector.load %arg2[%c20, %c0_10] : memref<36x128xf32, #tpu.memory_space<vmem>>, vector<4x128xf32>
    tpu.vector_store %arg2[%c20, %c0_10], %21 {strides = array<i32>} : memref<36x128xf32, #tpu.memory_space<vmem>>, vector<4x128xf32>,
    %c24 = arith.constant 24 : index
    %c0_11 = arith.constant 0 : index
    %24 = vector.load %arg2[%c24, %c0_11] : memref<36x128xf32, #tpu.memory_space<vmem>>, vector<4x128xf32>
    tpu.vector_store %arg2[%c24, %c0_11], %22 {strides = array<i32>} : memref<36x128xf32, #tpu.memory_space<vmem>>, vector<4x128xf32>,
    %25 = vector.extract_strided_slice %11 {offsets = [12, 0], sizes = [4, 128], strides = [1, 1]} : vector<16x128xf32> to vector<4x128xf32>
    %26 = vector.extract_strided_slice %12 {offsets = [12, 0], sizes = [4, 128], strides = [1, 1]} : vector<16x128xf32> to vector<4x128xf32>
    %c28 = arith.constant 28 : index
    %c0_12 = arith.constant 0 : index
    %27 = vector.load %arg2[%c28, %c0_12] : memref<36x128xf32, #tpu.memory_space<vmem>>, vector<4x128xf32>
    tpu.vector_store %arg2[%c28, %c0_12], %25 {strides = array<i32>} : memref<36x128xf32, #tpu.memory_space<vmem>>, vector<4x128xf32>,
    %c32 = arith.constant 32 : index
    %c0_13 = arith.constant 0 : index
    %28 = vector.load %arg2[%c32, %c0_13] : memref<36x128xf32, #tpu.memory_space<vmem>>, vector<4x128xf32>
    tpu.vector_store %arg2[%c32, %c0_13], %26 {strides = array<i32>} : memref<36x128xf32, #tpu.memory_space<vmem>>, vector<4x128xf32>,
    return
  }
  func.func @transform_0(%arg0: i32) -> (i32, i32) {
    %c0_i32 = arith.constant 0 : i32
    %c0_i32_0 = arith.constant 0 : i32
    return %c0_i32, %arg0 : i32, i32
  }
  func.func @transform_1(%arg0: i32) -> (i32, i32) {
    %c0_i32 = arith.constant 0 : i32
    %c0_i32_0 = arith.constant 0 : i32
    return %c0_i32, %arg0 : i32, i32
  }
}

</mosaic_0001>

<bundles_post_ra>
// kernel: tpu_custom_call.1
= control target key start
LH: loop header
LB: loop body
LE: loop exit
PB: predicated region body
PF: predicated region fallthrough
CT: control target
= control target key end

     0   :  { %6 = vsyncpa [#allocation3], 0  ;;  %s1364_s0 = inlined_call_operand.hbm [shape: f32[4,256], index: 0, kind: input, shape index: {}]   ;;  %s1365_s1 = inlined_call_operand.hbm [shape: f32[36,256], index: 1, kind: output, shape index: {}]  }
   0x1   :  { %8 = vsyncpa [#allocation3 + $0x1], 0 }
   0x2   :  { %9 = vsyncpa [#allocation4], 0 }
   0x3   :  { %11 = vsyncpa [#allocation4 + $0x1], 0  ;;  %s1059_s6 = smov 0   ;;  %s1061_s7 = smov 0  }
   0x4   :  { %s1063_s8 = smov 0   ;;  %s1065_s9 = smov 0  }
   0x5 LB: > { %s1080_s10 = sadd.s32 4294967295, %s1037_s9   ;;  %s862_s11 = sadd.s32 4294967294, %s1037_s9   ;;  %s1037_s9 = sphi %s1065_s9, %s1377_s9   ;;  %s1033_s8 = sphi %s1063_s8, %s1376_s8   ;;  %s1029_s7 = sphi %s1061_s7, %s1375_s7   ;;  %s1025_s6 = sphi %s1059_s6, %s1374_s6  }
   0x6   : > { %s1084_s12 = sadd.s32 1, %s1037_s9   ;;  %s24_s13 = sadd.s32 1, %s1033_s8 }
   0x7   : > { %s21_s14 = ssub.s32 %s1037_s9, %s1084_s12  ;;  %p31_p0 = scmp.ne.s32.totalorder %s1033_s8, %s1029_s7 }
   0x8   : > { %p22_p1 = scmp.eq.s32.totalorder %s21_s14, 0  ;;  %p32_p2 = scmp.eq.s32.totalorder %s1037_s9, 0 }
   0x9   : > { %p37_p3 = scmp.ne.s32.totalorder %s1029_s7, %s1025_s6  ;;  %p38_p4 = scmp.eq.s32.totalorder %s1080_s10, 0 }
   0xa   : > { %s1096_s15 = scalar_select %p22_p1, %s1033_s8, %s24_s13  }
   0xb   : > { %p1098_p5 = por %p32_p2, %p31_p0  ;;  %p1102_p6 = por %p38_p4, %p37_p3 }
   0xc   : > { %p61_p7 = scmp.eq.s32.totalorder %s1080_s10, 1  ;;  %p67_p8 = scmp.eq.s32.totalorder %s862_s11, 1 }
   0xd   : > { %p897_p10 = scmp.lt.s32.totalorder %s1037_s9, 2  ;;  %s87_s20 = sand.u32 1, %s1033_s8  }
   0xe   : > { %p1109_p11 = por %p61_p7, %p31_p0  ;;  %p1113_p12 = por %p67_p8, %p37_p3 }
   0xf   : > { %s866_s21 = sshll.u32 %s1037_s9, 2  ;;  %s865_s22 = sshll.u32 %s87_s20, 2 }
  0x10   : > { %s95_s25 = scalar_lea.hbm %s1364_s0, %s866_s21  ;;  %s91_s27 = scalar_lea.vmem [#allocation2], %s865_s22 }
  0x11   : > { %s97_s26 = sshll.u32 %s95_s25, 4  ;;  %s99_s28 = sshll.u32 %s91_s27, 4  ;;  %s98_s26 = int_to_ptr.hbm [resolvable:$true] %s97_s26  ;;  %s100_s28 = int_to_ptr.vmem [resolvable:$true] %s99_s28 }
  0x12   : > { %p1124_p13 = pnand %p897_p10, %p1098_p5  ;;  %p867_p0 = scmp.ge.s32.totalorder %s1037_s9, 1 }
  0x13   : > { %p104_p1 = scmp.lt.s32.totalorder %s1037_s9, 3  ;;  %s88_s30 = scalar_lea.sflag [#allocation3], %s87_s20 }
  0x14   : > { %s941_s2 = sshra.s32 %s98_s26, 4  ;;  %p945_p3 = pneg %p1124_p13  ;;  %s942_s2 = int_to_ptr.hbm [resolvable:$true] %s941_s2 }
  0x15   : > { %s943_s3 = scalar_lea.hbm %s942_s2, 4  ;;  %s948_s11 = scalar_lea.hbm %s1364_s0, 8 }
  0x16   : > { %p944_p2 = scmp.ne.s32.totalorder %s942_s2, %s943_s3  ;;  %p949_p5 = scmp.lt.s32.totalorder %s942_s2, %s1364_s0 }
  0x17   : > { %p950_p8 = scmp.lt.s32.totalorder %s948_s11, %s943_s3 }
  0x18   : > { %p946_p4 = pnand %p945_p3, %p944_p2 }
  0x19   : > { %p951_p10 = por %p950_p8, %p949_p5 }
  0x1a   : > { %p947_p7 = pneg %p946_p4 }
  0x1c   : > { %p952_p9 = pnand %p951_p10, %p947_p7 }
  0x1e   : > { %955 = shalt.err (!%p952_p9)
}
  0x1f   : > { %892 = dma.hbm_to_vmem [thread:$0]  (!%p1124_p13), %s98_s26, 64, %s100_s28, %s88_s30  }
  0x20   : > { %p105_p2 = pnand %p867_p0, %p104_p1 }
  0x21   : > { %s1145_s16 = sand.u32 (!%p105_p2), 1, %s1029_s7  }
  0x22   : > { %108 = sbr.rel (%p105_p2) target bundleno = 170 (0xaa), region = 24  ;;  %s868_s20 = sshll.u32 (!%p105_p2), %s1145_s16, 2 }
  0x23   : > { %s111_s21 = scalar_lea.sflag (!%p105_p2), [#allocation3], %s1145_s16  ;;  %s114_s22 = scalar_lea.vmem (!%p105_p2), [#allocation2], %s868_s20 }
  0x27   : > { %1016 = dma.done.wait (%p1102_p6), %s111_s21, 64  }
  0x28   : > { %1018 = vsyncadd (%p1102_p6), %s111_s21, 4294967232  ;;  %s884_s23 = smul.u32 40, %s1145_s16  ;;  %v134_v0 = vld [vmem:[%s114_s22] sm:$0xf]  ;;  %vm145_vm0 = vcmask 1043456   ;;  %s881_s17 = sshll.u32 %s1080_s10, 3 }
  0x29   : > { %v136_v1 = vmul.f32 2.0, %v134_v0  ;;  %v137_v2 = vmul.f32 4.0, %v134_v0  ;;  %v138_v3 = vmul.f32 8.0, %v134_v0  ;;  %v1039_v29 = vmov 683565275   ;;  %s785_s27 = scalar_lea.hbm %s1365_s1, %s881_s17  ;;  %s775_s29 = scalar_lea.sflag [#allocation4], %s1145_s16 }
  0x2a   : > { %s1154_s24 = scalar_lea.vmem [#allocation5], %s884_s23  ;;  %v1040_v31 = vmov 2475754826   ;;  %v1041_v33 = vmov 2131351028   ;;  %s788_s28 = sshll.u32 %s785_s27, 4  ;;  %s789_s28 = int_to_ptr.hbm [resolvable:$true] %s788_s28 }
  0x2b   : > { %135 = vst [vmem:[%s1154_s24] sm:$0xf] %v134_v0  ;;  %v140_v4 = vrot.slane %v136_v1, 4  ;;  %v143_v5 = vrot.slane %v138_v3, 4  ;;  %v1042_v35 = vmov 2102212464   ;;  %s786_s10 = sshll.u32 %s1154_s24, 4  ;;  %s787_s10 = int_to_ptr.vmem [resolvable:$true] %s786_s10 }
  0x2c   : > { %v1043_v37 = vmov 920167782   ;;  %v1044_v46 = vmov 1326507024   ;;  %s985_s30 = sshra.s32 %s789_s28, 4  ;;  %s991_s5 = scalar_lea.hbm %s1365_s1, 80  ;;  %s986_s30 = int_to_ptr.hbm [resolvable:$true] %s985_s30 }
  0x2d   : > { %v1157_v6 = vsel %vm145_vm0, %v134_v0, %v140_v4  ;;  %v1159_v7 = vsel %vm145_vm0, %v137_v2, %v143_v5  ;;  %s987_s2 = scalar_lea.hbm %s986_s30, 40  ;;  %p992_p0 = scmp.lt.s32.totalorder %s986_s30, %s1365_s1 }
  0x2e   : > { %v148_v8 = vand.u32 2147483647, %v1157_v6  ;;  %v151_v9 = vand.u32 2139095040, %v1157_v6  ;;  %v303_v10 = vand.u32 2147483647, %v1159_v7  ;;  %v306_v11 = vand.u32 2139095040, %v1159_v7  ;;  %p988_p6 = scmp.ne.s32.totalorder %s986_s30, %s987_s2  ;;  %p993_p1 = scmp.lt.s32.totalorder %s991_s5, %s987_s2 }
  0x30   : > { %v152_v12 = vshrl.u32 %v151_v9, 23  ;;  %v155_v13 = vand.u32 8388607, %v148_v8  ;;  %v307_v14 = vshrl.u32 %v306_v11, 23  ;;  %v310_v18 = vand.u32 8388607, %v303_v10  ;;  %p989_p9 = pnand %p988_p6, %p1109_p11  ;;  %p994_p3 = por %p993_p1, %p992_p0 }
  0x32   : > { %v869_v15 = vadd.s32 4294967169, %v152_v12  ;;  %v156_v16 = vor.u32 8388608, %v155_v13  ;;  %v872_v17 = vadd.s32 4294967169, %v307_v14  ;;  %v311_v23 = vor.u32 8388608, %v310_v18  ;;  %p990_p13 = pneg %p989_p9 }
  0x34   : > { %v158_v19 = vadd.s32 1, %v869_v15  ;;  %v313_v20 = vadd.s32 1, %v872_v17  ;;  %v1169_v22 = vshll.u32 %v156_v16, 8  ;;  %v1179_v40 = vshll.u32 %v311_v23, 8  ;;  %p995_p4 = pnand %p994_p3, %p990_p13 }
  0x36   : > { %vm159_vm1 = vcmp.gt.s32.totalorder %v158_v19, 0  ;;  %vm314_vm2 = vcmp.gt.s32.totalorder %v313_v20, 0  ;;  %v197_v39 = vand.u32 65535, %v1169_v22  ;;  %v198_v44 = vshrl.u32 %v1169_v22, 16 }
  0x37   : > { %v160_v21 = vsel %vm159_vm1, %v158_v19, 0  ;;  %v315_v25 = vsel %vm314_vm2, %v313_v20, 0 }
  0x38   : > { %v162_v24 = vand.u32 31, %v160_v21  ;;  %v1171_v26 = vshrl.u32 %v160_v21, 5  ;;  %v1173_v27 = vand.u32 31, %v315_v25  ;;  %v1197_v57 = vshrl.u32 %v315_v25, 5 }
  0x3a   : > { %v163_v28 = vsub.s32 32, %v162_v24  ;;  %v165_v30 = vshll.u32 %v1039_v29, %v162_v24  ;;  %v168_v32 = vshll.u32 %v1040_v31, %v162_v24  ;;  %v171_v34 = vshll.u32 %v1041_v33, %v162_v24 }
  0x3b   : > { %v174_v36 = vshll.u32 %v1042_v35, %v162_v24  ;;  %v177_v38 = vshll.u32 %v1043_v37, %v162_v24  ;;  %vm180_vm3 = vcmp.lt.s32.totalorder %v1171_v26, 1  ;;  %vm183_vm4 = vcmp.lt.s32.totalorder %v1171_v26, 4 }
  0x3c   : > { %v166_v41 = vshrl.u32 %v1040_v31, %v163_v28  ;;  %v169_v42 = vshrl.u32 %v1041_v33, %v163_v28  ;;  %v172_v43 = vshrl.u32 %v1042_v35, %v163_v28  ;;  %v175_v45 = vshrl.u32 %v1043_v37, %v163_v28 }
  0x3d   : > { %v178_v47 = vshrl.u32 %v1044_v46, %v163_v28  ;;  %v1188_v51 = vsub.s32 32, %v1173_v27  ;;  %v164_v52 = vshrl.u32 %v1039_v29, %v163_v28  ;;  %vm182_vm5 = vcmp.lt.s32.totalorder %v1171_v26, 3 }
  0x3e   : > { %v167_v48 = vor.u32 %v166_v41, %v165_v30  ;;  %v170_v49 = vor.u32 %v169_v42, %v168_v32  ;;  %v173_v50 = vor.u32 %v172_v43, %v171_v34  ;;  %v176_v53 = vor.u32 %v175_v45, %v174_v36 }
  0x3f   : > { %v179_v54 = vor.u32 %v178_v47, %v177_v38  ;;  %vm181_vm6 = vcmp.lt.s32.totalorder %v1171_v26, 2  ;;  %v320_v60 = vshll.u32 %v1039_v29, %v1173_v27  ;;  %v323_v61 = vshll.u32 %v1040_v31, %v1173_v27 }
  0x40   : > { %v188_v55 = vsel %vm180_vm3, %v167_v48, %v170_v49  ;;  %v192_v56 = vsel %vm180_vm3, %v170_v49, %v173_v50  ;;  %v189_v58 = vsel %vm183_vm4, %v176_v53, 920167782  ;;  %v185_v62 = vsel %vm183_vm4, %v173_v50, 2102212464 }
  0x41   : > { %v193_v59 = vsel %vm183_vm4, %v179_v54, 1326507024  ;;  %v190_v63 = vsel %vm182_vm5, %v173_v50, %v189_v58  ;;  %v321_v1 = vshrl.u32 %v1040_v31, %v1188_v51  ;;  %v184_v2 = vsel %vm180_vm3, %v164_v52, %v167_v48 }
  0x42   : > { %v194_v0 = vsel %vm182_vm5, %v176_v53, %v193_v59  ;;  %v191_v3 = vsel %vm181_vm6, %v188_v55, %v190_v63  ;;  %v324_v5 = vshrl.u32 %v1041_v33, %v1188_v51  ;;  %v186_v14 = vsel %vm182_vm5, %v170_v49, %v185_v62 }
  0x43   : > { %v195_v4 = vsel %vm181_vm6, %v192_v56, %v194_v0  ;;  %v221_v12 = vand.u32 65535, %v191_v3  ;;  %v222_v13 = vshrl.u32 %v191_v3, 16  ;;  %v1222_v15 = vor.u32 %v321_v1, %v320_v60 }
  0x44   : > { %v199_v9 = vand.u32 65535, %v195_v4  ;;  %v200_v11 = vshrl.u32 %v195_v4, 16  ;;  %v1224_v16 = vor.u32 %v324_v5, %v323_v61  ;;  %v326_v17 = vshll.u32 %v1041_v33, %v1173_v27 }
  0x45   : > { %v327_v21 = vshrl.u32 %v1042_v35, %v1188_v51  ;;  %v223_v24 = vmul.u32 %v221_v12, %v197_v39  ;;  %v224_v25 = vmul.u32 %v222_v13, %v197_v39  ;;  %v225_v28 = vmul.u32 %v221_v12, %v198_v44 }
  0x46   : > { %v201_v18 = vmul.u32 %v199_v9, %v197_v39  ;;  %v202_v19 = vmul.u32 %v200_v11, %v197_v39  ;;  %v203_v20 = vmul.u32 %v199_v9, %v198_v44  ;;  %v204_v23 = vmul.u32 %v200_v11, %v198_v44 }
  0x47   : > { %v226_v34 = vmul.u32 %v222_v13, %v198_v44  ;;  %v227_v38 = vshll.u32 %v224_v25, 16  ;;  %v228_v41 = vshrl.u32 %v224_v25, 16  ;;  %v229_v42 = vshll.u32 %v225_v28, 16 }
  0x48   : > { %v205_v30 = vshll.u32 %v202_v19, 16  ;;  %v206_v31 = vshrl.u32 %v202_v19, 16  ;;  %v207_v32 = vshll.u32 %v203_v20, 16  ;;  %v208_v36 = vshrl.u32 %v203_v20, 16 }
  0x49   : > { %v230_v43 = vshrl.u32 %v225_v28, 16  ;;  %v329_v45 = vshll.u32 %v1042_v35, %v1173_v27  ;;  %v1045_v47 = vmov 0   ;;  %vm231_vm8 = vc.u32 %v223_v24, %v227_v38 }
  0x4a   : > { %vm209_vm7 = vc.u32 %v201_v18, %v205_v30  ;;  %v211_v33 = vadd.s32 %v205_v30, %v201_v18  ;;  %v233_v39 = vadd.s32 %v227_v38, %v223_v24  ;;  %v330_v49 = vshrl.u32 %v1043_v37, %v1188_v51 }
  0x4b   : > { %v210_v48 = vsel %vm209_vm7, 1, %v1045_v47  ;;  %v232_v44 = vsel %vm231_vm8, 1, %v1045_v47  ;;  %v332_v52 = vshll.u32 %v1043_v37, %v1173_v27  ;;  %v328_v35 = vor.u32 %v327_v21, %v326_v17 }
  0x4c   : > { %v212_v50 = vadd.s32 %v210_v48, %v204_v23  ;;  %vm213_vm9 = vc.u32 %v211_v33, %v207_v32  ;;  %v234_v54 = vadd.s32 %v232_v44, %v226_v34  ;;  %vm235_vm10 = vc.u32 %v233_v39, %v229_v42 }
  0x4d   : > { %v214_v53 = vsel %vm213_vm9, 1, %v1045_v47  ;;  %v236_v56 = vsel %vm235_vm10, 1, %v1045_v47  ;;  %v331_v58 = vor.u32 %v330_v49, %v329_v45  ;;  %v333_v59 = vshrl.u32 %v1044_v46, %v1188_v51 }
  0x4e   : > { %v216_v55 = vadd.s32 %v214_v53, %v212_v50  ;;  %v1241_v60 = vadd.s32 %v233_v39, %v229_v42  ;;  %v238_v61 = vadd.s32 %v236_v56, %v234_v54  ;;  %vm335_vm11 = vcmp.lt.s32.totalorder %v1197_v57, 1 }
  0x4f   : > { %vm337_vm12 = vcmp.lt.s32.totalorder %v1197_v57, 3  ;;  %v334_v37 = vor.u32 %v333_v59, %v332_v52  ;;  %vm336_vm13 = vcmp.lt.s32.totalorder %v1197_v57, 2  ;;  %vm338_vm14 = vcmp.lt.s32.totalorder %v1197_v57, 4 }
  0x50   : > { %v217_v27 = vadd.s32 %v216_v55, %v206_v31  ;;  %v187_v62 = vsel %vm181_vm6, %v184_v2, %v186_v14  ;;  %v239_v63 = vadd.s32 %v238_v61, %v228_v41  ;;  %v343_v46 = vsel %vm335_vm11, %v1222_v15, %v1224_v16 }
  0x51   : > { %v344_v0 = vsel %vm338_vm14, %v331_v58, 920167782  ;;  %v347_v4 = vsel %vm335_vm11, %v1224_v16, %v328_v35  ;;  %v352_v26 = vand.u32 65535, %v1179_v40  ;;  %v348_v9 = vsel %vm338_vm14, %v334_v37, 1326507024 }
  0x52   : > { %v1255_v1 = vadd.s32 %v217_v27, %v208_v36  ;;  %v345_v3 = vsel %vm337_vm12, %v328_v35, %v344_v0  ;;  %v240_v2 = vadd.s32 %v239_v63, %v230_v43  ;;  %v353_v11 = vshrl.u32 %v1179_v40, 16 }
  0x53   : > { %v346_v5 = vsel %vm336_vm13, %v343_v46, %v345_v3  ;;  %v241_v12 = vmul.u32 %v1169_v22, %v187_v62  ;;  %v349_v13 = vsel %vm337_vm12, %v331_v58, %v348_v9  ;;  %v319_v20 = vshrl.u32 %v1039_v29, %v1188_v51 }
  0x54   : > { %vm243_vm15 = vc.u32 %v1255_v1, %v1241_v60  ;;  %v376_v14 = vand.u32 65535, %v346_v5  ;;  %v244_v17 = vadd.s32 1, %v240_v2  ;;  %v350_v18 = vsel %vm336_vm13, %v347_v4, %v349_v13 }
  0x55   : > { %v377_v19 = vshrl.u32 %v346_v5, 16  ;;  %v354_v21 = vand.u32 65535, %v350_v18  ;;  %v355_v23 = vshrl.u32 %v350_v18, 16  ;;  %v340_v36 = vsel %vm338_vm14, %v328_v35, 2102212464 }
  0x56   : > { %v245_v24 = vsel %vm243_vm15, %v244_v17, %v240_v2  ;;  %v378_v25 = vmul.u32 %v376_v14, %v352_v26  ;;  %v380_v28 = vmul.u32 %v376_v14, %v353_v11  ;;  %v339_v48 = vsel %vm335_vm11, %v319_v20, %v1222_v15 }
  0x57   : > { %v379_v22 = vmul.u32 %v377_v19, %v352_v26  ;;  %v246_v30 = vadd.s32 %v245_v24, %v241_v12  ;;  %v356_v31 = vmul.u32 %v354_v21, %v352_v26  ;;  %v357_v32 = vmul.u32 %v355_v23, %v352_v26 }
  0x58   : > { %v358_v34 = vmul.u32 %v354_v21, %v353_v11  ;;  %v359_v42 = vmul.u32 %v355_v23, %v353_v11  ;;  %v381_v45 = vmul.u32 %v377_v19, %v353_v11  ;;  %v384_v29 = vshll.u32 %v380_v28, 16 }
  0x59   : > { %v382_v38 = vshll.u32 %v379_v22, 16  ;;  %v247_v41 = vadd.s32 536870912, %v246_v30  ;;  %v360_v33 = vshll.u32 %v357_v32, 16  ;;  %v341_v49 = vsel %vm337_vm12, %v1224_v16, %v340_v36 }
  0x5a   : > { %v362_v43 = vshll.u32 %v358_v34, 16  ;;  %v361_v54 = vshrl.u32 %v357_v32, 16  ;;  %v383_v56 = vshrl.u32 %v379_v22, 16  ;;  %v363_v59 = vshrl.u32 %v358_v34, 16 }
  0x5b   : > { %vm386_vm0 = vc.u32 %v378_v25, %v382_v38  ;;  %v1279_v51 = vshrl.u32 %v247_v41, 30  ;;  %vm364_vm1 = vc.u32 %v356_v31, %v360_v33  ;;  %v366_v39 = vadd.s32 %v360_v33, %v356_v31 }
  0x5c   : > { %v365_v50 = vsel %vm364_vm1, 1, %v1045_v47  ;;  %v387_v44 = vsel %vm386_vm0, 1, %v1045_v47  ;;  %v388_v52 = vadd.s32 %v382_v38, %v378_v25  ;;  %v385_v27 = vshrl.u32 %v380_v28, 16 }
  0x5d   : > { %v249_v53 = vshll.u32 %v1279_v51, 30  ;;  %v367_v35 = vadd.s32 %v365_v50, %v359_v42  ;;  %vm368_vm2 = vc.u32 %v366_v39, %v362_v43  ;;  %v389_v15 = vadd.s32 %v387_v44, %v381_v45 }
  0x5e   : > { %v369_v55 = vsel %vm368_vm2, 1, %v1045_v47  ;;  %vm390_vm3 = vc.u32 %v388_v52, %v384_v29  ;;  %v392_v46 = vadd.s32 %v388_v52, %v384_v29  ;;  %v342_v0 = vsel %vm336_vm13, %v339_v48, %v341_v49 }
  0x5f   : > { %v250_v58 = vsub.s32 %v246_v30, %v249_v53  ;;  %v371_v61 = vadd.s32 %v369_v55, %v367_v35  ;;  %v391_v16 = vsel %vm390_vm3, 1, %v1045_v47  ;;  %v396_v9 = vmul.u32 %v1179_v40, %v342_v0 }
  0x60   : > { %v393_v37 = vadd.s32 %v391_v16, %v389_v15  ;;  %v242_v47 = vadd.s32 %v1241_v60, %v1255_v1  ;;  %v272_v34 = vsub.s32 4, %v1279_v51  ;;  %vm150_vm8 = vcmp.lt.s32.totalorder %v1157_v6, 0 }
  0x61   : > { %vm251_vm4 = vcmp.lt.s32.totalorder %v250_v58, 0  ;;  %v252_v62 = vsub.s32 0, %v250_v58  ;;  %v372_v63 = vadd.s32 %v371_v61, %v361_v54  ;;  %vm149_vm9 = vcmp.le.f32.partialorder %v148_v8, 0.7853982 }
  0x62   : > { %v394_v3 = vadd.s32 %v393_v37, %v383_v56  ;;  %v273_v33 = vsel %vm150_vm8, %v272_v34, %v1279_v51  ;;  %vm1309_vm13 = vcmp.le.f32.partialorder %v303_v10, 0.7853982  ;;  %vm305_vm14 = vcmp.lt.s32.totalorder %v1159_v7, 0 }
  0x63   : > { %v253_v4 = vsel %vm251_vm4, %v252_v62, %v250_v58  ;;  %v373_v26 = vadd.s32 %v372_v63, %v363_v59  ;;  %v275_v39 = vsel %vm149_vm9, 0, %v273_v33  ;;  %vm291_vm3 = vweird.f32 %v1157_v6 }
  0x64   : > { %v254_v2 = vclz %v253_v4  ;;  %v395_v5 = vadd.s32 %v394_v3, %v385_v27  ;;  %v292_v56 = vadd.s32 3, %v275_v39  ;;  %v602_v62 = vand.u32 3, %v275_v39 }
  0x65   : > { %vm398_vm5 = vc.u32 %v373_v26, %v392_v46  ;;  %v397_v48 = vadd.s32 %v392_v46, %v373_v26 }
  0x66   : > { %v870_v11 = vadd.s32 4294967294, %v254_v2  ;;  %v399_v12 = vadd.s32 1, %v395_v5  ;;  %v293_v37 = vand.u32 3, %v292_v56  ;;  %vm607_vm12 = vcmp.eq.s32.totalorder %v602_v62, 2 }
  0x67   : > { %vm604_vm1 = vcmp.eq.s32.totalorder %v602_v62, 0  ;;  %vm603_vm2 = vcmp.lt.s32.totalorder %v602_v62, 2 }
  0x68   : > { %vm871_vm6 = vcmp.lt.s32.totalorder %v870_v11, 0  ;;  %v400_v13 = vsel %vm398_vm5, %v399_v12, %v395_v5  ;;  %vm298_vm11 = vcmp.eq.s32.totalorder %v293_v37, 2  ;;  %vm294_vm15 = vcmp.lt.s32.totalorder %v293_v37, 2 }
  0x69   : > { %v257_v14 = vsel %vm871_vm6, 0, %v870_v11  ;;  %v401_v17 = vadd.s32 %v400_v13, %v396_v9  ;;  %vm295_vm0 = vcmp.eq.s32.totalorder %v293_v37, 0 }
  0x6a   : > { %v258_v18 = vsub.s32 32, %v257_v14  ;;  %v259_v57 = vshll.u32 %v250_v58, %v257_v14  ;;  %v262_v19 = vsub.s32 4294967266, %v257_v14 }
  0x6b   : > { %v402_v20 = vadd.s32 536870912, %v401_v17 }
  0x6c   : > { %v260_v21 = vshrl.u32 %v242_v47, %v258_v18  ;;  %v263_v23 = vadd.s32 127, %v262_v19 }
  0x6d   : > { %v1297_v24 = vshrl.u32 %v402_v20, 30 }
  0x6e   : > { %v261_v25 = vor.u32 %v260_v21, %v259_v57  ;;  %v264_v40 = vshll.u32 %v263_v23, 23 }
  0x6f   : > { %v404_v22 = vshll.u32 %v1297_v24, 30  ;;  %v427_v9 = vsub.s32 4, %v1297_v24 }
  0x70   : > { %v265_v28 = vor.u32 4788187, %v264_v40  ;;  %v268_v30 = vcvt.s32.f32 %v261_v25 }
  0x71   : > { %v405_v31 = vsub.s32 %v401_v17, %v404_v22  ;;  %v428_v10 = vsel %vm305_vm14, %v427_v9, %v1297_v24 }
  0x72   : > { %v266_v60 = vand.u32 2147483647, %v265_v28 }
  0x73   : > { %vm406_vm7 = vcmp.lt.s32.totalorder %v405_v31, 0  ;;  %v407_v1 = vsub.s32 0, %v405_v31 }
  0x74   : > { %v269_v32 = vmul.f32 %v268_v30, %v266_v60  ;;  %v430_v30 = vsel %vm1309_vm13, 0, %v428_v10 }
  0x75   : > { %v408_v36 = vsel %vm406_vm7, %v407_v1, %v405_v31  ;;  %v447_v1 = vadd.s32 3, %v430_v30 }
  0x76   : > { %v270_v38 = vxor.u32 2147483648, %v269_v32  ;;  %v409_v41 = vclz %v408_v36 }
  0x78   : > { %v271_v42 = vsel %vm150_vm8, %v270_v38, %v269_v32  ;;  %v873_v43 = vadd.s32 4294967294, %v409_v41  ;;  %v448_v41 = vand.u32 3, %v447_v1 }
  0x79   : > { %v274_v45 = vsel %vm149_vm9, %v1157_v6, %v271_v42  ;;  %v756_v42 = vand.u32 3, %v430_v30 }
  0x7a   : > { %v276_v29 = vmul.f32 %v274_v45, %v274_v45  ;;  %vm874_vm10 = vcmp.lt.s32.totalorder %v873_v43, 0  ;;  %vm453_vm4 = vcmp.eq.s32.totalorder %v448_v41, 2  ;;  %vm449_vm6 = vcmp.lt.s32.totalorder %v448_v41, 2 }
  0x7b   : > { %v412_v49 = vsel %vm874_vm10, 0, %v873_v43  ;;  %vm761_vm5 = vcmp.eq.s32.totalorder %v756_v42, 2  ;;  %vm450_vm7 = vcmp.eq.s32.totalorder %v448_v41, 0  ;;  %vm758_vm8 = vcmp.eq.s32.totalorder %v756_v42, 0 }
  0x7c   : > { %v277_v50 = vmul.f32 -0.001358992, %v276_v29  ;;  %v284_v44 = vmul.f32 -0.00019511016, %v276_v29  ;;  %v413_v52 = vsub.s32 32, %v412_v49  ;;  %v414_v53 = vshll.u32 %v405_v31, %v412_v49 }
  0x7d   : > { %v417_v54 = vsub.s32 4294967266, %v412_v49  ;;  %vm757_vm9 = vcmp.lt.s32.totalorder %v756_v42, 2  ;;  %vm446_vm10 = vweird.f32 %v1159_v7 }
  0x7e   : > { %v278_v35 = vadd.f32 0.041655596, %v277_v50  ;;  %v285_v8 = vadd.f32 0.008332121, %v284_v44  ;;  %v415_v55 = vshrl.u32 %v397_v48, %v413_v52 }
  0x7f   : > { %v418_v15 = vadd.s32 127, %v417_v54 }
  0x80   : > { %v279_v58 = vmul.f32 %v278_v35, %v276_v29  ;;  %v286_v51 = vmul.f32 %v285_v8, %v276_v29  ;;  %v416_v59 = vor.u32 %v415_v55, %v414_v53 }
  0x81   : > { %v419_v61 = vshll.u32 %v418_v15, 23 }
  0x82   : > { %v280_v16 = vadd.f32 -0.4999988, %v279_v58  ;;  %v287_v27 = vadd.f32 -0.16666654, %v286_v51  ;;  %v423_v46 = vcvt.s32.f32 %v416_v59 }
  0x83   : > { %v420_v63 = vor.u32 4788187, %v419_v61 }
  0x84   : > { %v281_v0 = vmul.f32 %v280_v16, %v276_v29  ;;  %v288_v3 = vmul.f32 %v287_v27, %v276_v29 }
  0x85   : > { %v421_v4 = vand.u32 2147483647, %v420_v63 }
  0x86   : > { %v282_v26 = vadd.f32 1.0, %v281_v0  ;;  %v289_v2 = vadd.f32 1.0, %v288_v3 }
  0x87   : > { %v424_v5 = vmul.f32 %v423_v46, %v421_v4 }
  0x88   : > { %v290_v11 = vmul.f32 %v289_v2, %v274_v45  ;;  %v299_v12 = vxor.u32 2147483648, %v282_v26 }
  0x89   : > { %v425_v13 = vxor.u32 2147483648, %v424_v5 }
  0x8a   : > { %v296_v14 = vxor.u32 2147483648, %v290_v11  ;;  %v300_v17 = vsel %vm298_vm11, %v299_v12, %v290_v11  ;;  %v609_v18 = vsel %vm607_vm12, %v299_v12, %v290_v11 }
  0x8b   : > { %v426_v57 = vsel %vm305_vm14, %v425_v13, %v424_v5 }
  0x8c   : > { %v297_v19 = vsel %vm295_vm0, %v282_v26, %v296_v14  ;;  %v606_v20 = vsel %vm604_vm1, %v282_v26, %v296_v14  ;;  %v429_v21 = vsel %vm1309_vm13, %v1159_v7, %v426_v57 }
  0x8d   : > { %v301_v23 = vsel %vm294_vm15, %v297_v19, %v300_v17  ;;  %v610_v25 = vsel %vm603_vm2, %v606_v20, %v609_v18  ;;  %v431_v40 = vmul.f32 %v429_v21, %v429_v21 }
  0x8e   : > { %v302_v22 = vsel %vm291_vm3, nan, %v301_v23  ;;  %v611_v28 = vsel %vm291_vm3, nan, %v610_v25 }
  0x8f   : > { %766 = vst [vmem:[%s1154_s24 + $0x4] sm:$0xf] %v302_v22  ;;  %v432_v6 = vmul.f32 -0.001358992, %v431_v40  ;;  %v439_v31 = vmul.f32 -0.00019511016, %v431_v40 }
  0x90   : > { %768 = vst [vmem:[%s1154_s24 + $0x8] sm:$0xf0] %v302_v22 }
  0x91   : > { %767 = vst [vmem:[%s1154_s24 + $0x8] sm:$0xf] %v611_v28  ;;  %v433_v24 = vadd.f32 0.041655596, %v432_v6  ;;  %v440_v60 = vadd.f32 0.008332121, %v439_v31 }
  0x92   : > { %769 = vst [vmem:[%s1154_s24 + $0xc] sm:$0xf0] %v611_v28 }
  0x93   : > { %v434_v32 = vmul.f32 %v433_v24, %v431_v40  ;;  %v441_v34 = vmul.f32 %v440_v60, %v431_v40 }
  0x95   : > { %v435_v36 = vadd.f32 -0.4999988, %v434_v32  ;;  %v442_v38 = vadd.f32 -0.16666654, %v441_v34 }
  0x97   : > { %v436_v33 = vmul.f32 %v435_v36, %v431_v40  ;;  %v443_v43 = vmul.f32 %v442_v38, %v431_v40 }
  0x99   : > { %v437_v45 = vadd.f32 1.0, %v436_v33  ;;  %v444_v29 = vadd.f32 1.0, %v443_v43 }
  0x9b   : > { %v445_v48 = vmul.f32 %v444_v29, %v429_v21  ;;  %v454_v39 = vxor.u32 2147483648, %v437_v45 }
  0x9d   : > { %v451_v49 = vxor.u32 2147483648, %v445_v48  ;;  %v455_v50 = vsel %vm453_vm4, %v454_v39, %v445_v48  ;;  %v763_v44 = vsel %vm761_vm5, %v454_v39, %v445_v48 }
  0x9f   : > { %v452_v52 = vsel %vm450_vm7, %v437_v45, %v451_v49  ;;  %v760_v53 = vsel %vm758_vm8, %v437_v45, %v451_v49 }
  0xa0   : > { %v456_v54 = vsel %vm449_vm6, %v452_v52, %v455_v50  ;;  %v764_v35 = vsel %vm757_vm9, %v760_v53, %v763_v44 }
  0xa1   : > { %v457_v8 = vsel %vm446_vm10, nan, %v456_v54  ;;  %v765_v55 = vsel %vm446_vm10, nan, %v764_v35 }
  0xa2   : > { %770 = vst [vmem:[%s1154_s24 + $0x14] sm:$0xf] %v457_v8 }
  0xa3   : > { %772 = vst [vmem:[%s1154_s24 + $0x18] sm:$0xf0] %v457_v8 }
  0xa4   : > { %771 = vst [vmem:[%s1154_s24 + $0x18] sm:$0xf] %v765_v55 }
  0xa5   : > { %773 = vst [vmem:[%s1154_s24 + $0x1c] sm:$0xf0] %v765_v55 }
  0xa6   : > { %998 = shalt.err (!%p995_p4)
}
  0xa7   : > { %s1046_s14 = smov 128   ;;  %s1047_s16 = smov 256  }
  0xa8   : > { %s1048_s20 = smov 8  }
  0xa9   : > { %887 = dma.vmem_to_hbm [thread:$0]  (%p1109_p11), %s787_s10, 640, %s789_s28, %s775_s29, %s1046_s14, %s1047_s16, %s1048_s20  }
  0xaa PF: > { %s803_s21 = sand.u32 1, %s1025_s6   ;;  %p1373_p7 = scmp.ge.s32.totalorder %s1037_s9, 2 }
  0xab   : > { %s804_s22 = scalar_lea.sflag [#allocation4], %s803_s21 }
  0xac   : > { %p894_p5 = pnand %p1373_p7, %p1113_p12 }
  0xae   : > { %p895_p8 = pneg %p894_p5 }
  0xb0   : > { %1020 = dma.done.wait (%p895_p8), %s804_s22, 640  }
  0xb1   : > { %1022 = vsyncadd (%p895_p8), %s804_s22, 4294966656  ;;  %p14_p10 = scmp.ge.s32.totalorder %s1084_s12, 4   ;;  %s1374_s6 = smov %s1029_s7 }
  0xb2   : > { %s1375_s7 = smov %s1033_s8  ;;  %s1376_s8 = smov %s1096_s15 }
  0xb3   : > { %s1377_s9 = smov %s1084_s12  ;;  %16 = sbr.rel (!%p14_p10) target bundleno = 5 (0x5), region = 69 }
  0xb8   :  { %810 = vsyncpa [#allocation3], 1 }
  0xb9   :  { %812 = vsyncpa [#allocation3 + $0x1], 1 }
  0xba   :  { %813 = vsyncpa [#allocation4], 1 }
  0xbb   :  { %815 = vsyncpa [#allocation4 + $0x1], 1 }

</bundles_post_ra>
